<compile_context>
chip_gen: v6e
topology: v6e:2x2x1
jax: 0.10.0
libtpu: 0.0.40
codegen_flags: <defaults>
</compile_context>

<pallas_src>
import functools

import numpy as np
import jax
import jax.numpy as jnp
from jax.experimental import pallas as pl
from jax.experimental.pallas import tpu as pltpu

# ----------------------------- module "init" ---------------------------------
WIN_SIZE = 11
WIN_SIGMA = 1.5
DATA_RANGE = 1.0          # module default None is unusable; inputs live in [0,1]
K1, K2 = 0.01, 0.03
C1 = (K1 * DATA_RANGE) ** 2
C2 = (K2 * DATA_RANGE) ** 2
CHANNEL = 3
SP = 8                    # sublane-aligned row stride per stat block in VMEM scratch


def _fspecial_gauss_1d(size, sigma):
    coords = np.arange(size, dtype=np.float64) - size // 2
    g = np.exp(-(coords ** 2) / (2.0 * sigma ** 2))
    return g / g.sum()


_GAUSS64 = _fspecial_gauss_1d(WIN_SIZE, WIN_SIGMA)
_GAUSS = _GAUSS64.astype(np.float32)


def _valid_conv_matrix(n):
    """(n, n - WIN_SIZE + 1) matrix of the 1-D 'valid' Gaussian blur."""
    no = n - WIN_SIZE + 1
    m = np.zeros((n, no), dtype=np.float64)
    for o in range(no):
        m[o:o + WIN_SIZE, o] = _GAUSS64
    return m


def _gauss2d_conv_matrix(H, W):
    """(H*W, Ho*Wo) matrix: 'valid' 11x11 separable Gaussian blur as one matmul.

    Built from the separable structure via a Kronecker product (cheap at host/trace
    time). Row index is (h, w) row-major, column index is (ho, wo) row-major.
    """
    return np.kron(_valid_conv_matrix(H), _valid_conv_matrix(W)).astype(np.float32)


# ----------------------------- fused Pallas kernel ----------------------------
def _fused_kernel(in_ref, g2_ref, out_ref, fstat_ref, bstat_ref, *, C, P):
    """One grid step processes BB batch items end-to-end.

    in_ref    : (BB, 2C+P, HW)   rows = [X (C) | Y (C) | part_mask (P)], X/Y in [-1,1]
    g2_ref    : (HW, Ho*Wo)      'valid' 11x11 Gaussian blur as a matmul (grid-invariant)
    out_ref   : (BB, 1, 1)       per-batch (foreground_mean + background_mean) / 2
    fstat_ref : (5*SP, HW) VMEM  stacked raw stats; stat q in rows [q*SP, q*SP+C)
    bstat_ref : (5*SP, HW) VMEM  stacked background-masked stats (same row layout)
    Pad rows of the scratch buffers are never read (their matmul columns/rows are
    sliced away), so they may hold garbage.
    """
    BB = in_ref.shape[0]
    for bi in range(BB):                      # static, tiny (1 or B/2)
        x = (in_ref[bi, 0:C, :] + 1.0) * 0.5          # (C, HW), lane-dense
        y = (in_ref[bi, C:2 * C, :] + 1.0) * 0.5
        bm = in_ref[bi, 2 * C:2 * C + 1, :]           # (1,  HW) background mask
        fm = in_ref[bi, 2 * C + 1:2 * C + P, :]       # (MCf, HW) foreground parts

        # ---- foreground part-SSIM: 5 masked reductions as ONE MXU matmul ----
        fstat_ref[0 * SP:0 * SP + C, :] = x
        fstat_ref[1 * SP:1 * SP + C, :] = y
        fstat_ref[2 * SP:2 * SP + C, :] = x * x
        fstat_ref[3 * SP:3 * SP + C, :] = y * y
        fstat_ref[4 * SP:4 * SP + C, :] = x * y

        # sums[mc, q*SP + c] = sum_hw fm[mc, hw] * stat_q[c, hw]
        sums = jax.lax.dot_general(
            fm, fstat_ref[...],
            dimension_numbers=(((1,), (1,)), ((), ())),
            preferred_element_type=jnp.float32)        # (MCf, 5*SP)

        inv = pl.reciprocal(jnp.sum(fm, axis=-1, keepdims=True) + 1e-6)   # (MCf, 1)

        mu1 = sums[:, 0 * SP:0 * SP + C] * inv
        mu2 = sums[:, 1 * SP:1 * SP + C] * inv
        mu11 = sums[:, 2 * SP:2 * SP + C] * inv
        mu22 = sums[:, 3 * SP:3 * SP + C] * inv
        mu12 = sums[:, 4 * SP:4 * SP + C] * inv

        mu1_sq = mu1 * mu1
        mu2_sq = mu2 * mu2
        mu1_mu2 = mu1 * mu2
        s1 = mu11 - mu1_sq                  # compensation = 1.0
        s2 = mu22 - mu2_sq
        s12 = mu12 - mu1_mu2

        f_num = (2.0 * mu1_mu2 + C1) * (2.0 * s12 + C2)
        f_den = (mu1_sq + mu2_sq + C1) * (s1 + s2 + C2)
        f_vals = f_num * pl.reciprocal(f_den)                              # (MCf, C)
        f_mean = jnp.mean(jnp.mean(f_vals, axis=-1, keepdims=True),
                          axis=0, keepdims=True)                           # (1, 1)

        # ---- background SSIM: batched 11x11 'valid' blur as ONE MXU matmul --
        bx = bm * x                                                        # (C, HW)
        by = bm * y
        bstat_ref[0 * SP:0 * SP + C, :] = bx
        bstat_ref[1 * SP:1 * SP + C, :] = by
        bstat_ref[2 * SP:2 * SP + C, :] = bx * bx
        bstat_ref[3 * SP:3 * SP + C, :] = by * by
        bstat_ref[4 * SP:4 * SP + C, :] = bx * by

        blur = jnp.dot(bstat_ref[...], g2_ref[...],
                       preferred_element_type=jnp.float32)                 # (5*SP, Ho*Wo)

        bmu1 = blur[0 * SP:0 * SP + C, :]
        bmu2 = blur[1 * SP:1 * SP + C, :]
        b11 = blur[2 * SP:2 * SP + C, :]
        b22 = blur[3 * SP:3 * SP + C, :]
        b12 = blur[4 * SP:4 * SP + C, :]

        bmu1_sq = bmu1 * bmu1
        bmu2_sq = bmu2 * bmu2
        bmu12 = bmu1 * bmu2
        sig1 = b11 - bmu1_sq
        sig2 = b22 - bmu2_sq
        sig12 = b12 - bmu12

        b_num = (2.0 * bmu12 + C1) * (2.0 * sig12 + C2)
        b_den = (bmu1_sq + bmu2_sq + C1) * (sig1 + sig2 + C2)
        ssim_map = b_num * pl.reciprocal(b_den)                            # (C, Ho*Wo)
        b_mean = jnp.mean(jnp.mean(ssim_map, axis=-1, keepdims=True),
                          axis=0, keepdims=True)                           # (1, 1)

        out_ref[bi] = (f_mean + b_mean) * 0.5


# ------------------------------ wrapper ---------------------------------------
def fpart_bssim_forward(X, Y, part_mask, *, size_average=True):
    X = X.astype(jnp.float32)
    Y = Y.astype(jnp.float32)
    pm = part_mask.astype(jnp.float32)

    B, C, H, W = X.shape
    P = pm.shape[1]
    HW = H * W
    Ho = H - WIN_SIZE + 1
    Wo = W - WIN_SIZE + 1

    # One lane-dense (rows, HW) input slab per batch item (free XLA reshapes/concat,
    # no replication) -> a single tensor-input DMA per grid step.
    packed = jnp.concatenate(
        [X.reshape(B, C, HW), Y.reshape(B, C, HW), pm.reshape(B, P, HW)], axis=1)

    # At most 2 "parallel" grid steps: feeds both TensorCores on v7x while keeping
    # the per-step pipeline overhead independent of B (1 step for odd B).
    NB = 2 if (B >= 2 and B % 2 == 0) else 1
    BB = B // NB

    G2 = jnp.asarray(_gauss2d_conv_matrix(H, W))        # (HW, Ho*Wo) constant

    per_batch = pl.pallas_call(
        functools.partial(_fused_kernel, C=C, P=P),
        out_shape=jax.ShapeDtypeStruct((B, 1, 1), jnp.float32),
        grid=(NB,),
        in_specs=[
            pl.BlockSpec((BB, 2 * C + P, HW), lambda g: (g, 0, 0)),
            pl.BlockSpec((HW, Ho * Wo), lambda g: (0, 0)),   # grid-invariant filter
        ],
        out_specs=pl.BlockSpec((BB, 1, 1), lambda g: (g, 0, 0)),
        scratch_shapes=[
            pltpu.VMEM((5 * SP, HW), jnp.float32),
            pltpu.VMEM((5 * SP, HW), jnp.float32),
        ],
        compiler_params=pltpu.CompilerParams(
            dimension_semantics=("parallel",)),
    )(packed, G2)

    per_batch = per_batch[:, 0, 0]          # (B,) == (f_mean_b + b_mean_b) / 2
    # size_average=True: mean over batch equals (global_f_mean + global_b_mean)/2
    # because every batch item contributes the same element counts.
    return jnp.mean(per_batch) if size_average else per_batch


# -------------------------- pure-JAX reference --------------------------------
def _reference_forward(X, Y, part_mask, size_average=True):
    X = (X + 1.0) / 2.0
    Y = (Y + 1.0) / 2.0
    B, C, H, W = X.shape
    f_mask = part_mask[:, 1:, :, :]
    MCf = f_mask.shape[1]
    Kc = MCf * C
    Xr = jnp.broadcast_to(X[:, None], (B, MCf, C, H, W)).reshape(B, Kc, H, W)
    Yr = jnp.broadcast_to(Y[:, None], (B, MCf, C, H, W)).reshape(B, Kc, H, W)
    Mr = jnp.broadcast_to(f_mask[:, :, None], (B, MCf, C, H, W)).reshape(B, Kc, H, W)
    m_sum = Mr.sum((-2, -1), keepdims=True)
    m_avg = Mr / (m_sum + 1e-6)
    mu1 = (Xr * m_avg).sum((-2, -1)); mu2 = (Yr * m_avg).sum((-2, -1))
    mu11 = (Xr * Xr * m_avg).sum((-2, -1)); mu22 = (Yr * Yr * m_avg).sum((-2, -1))
    mu12 = (Xr * Yr * m_avg).sum((-2, -1))
    s1 = mu11 - mu1 ** 2; s2 = mu22 - mu2 ** 2; s12 = mu12 - mu1 * mu2
    cs = (2 * s12 + C2) / (s1 + s2 + C2)
    ssim_f = (2 * mu1 * mu2 + C1) / (mu1 ** 2 + mu2 ** 2 + C1) * cs
    f_ssim = ssim_f.mean() if size_average else ssim_f.mean(-1)

    g = jnp.asarray(_GAUSS, jnp.float32)
    bm = part_mask[:, 0:1, :, :]
    bX = bm * X
    bY = bm * Y

    def blur(v):
        Ho = v.shape[-2] - WIN_SIZE + 1
        Wo = v.shape[-1] - WIN_SIZE + 1
        a = sum(g[k] * v[..., k:k + Ho, :] for k in range(WIN_SIZE))
        return sum(g[k] * a[..., k:k + Wo] for k in range(WIN_SIZE))

    mu1 = blur(bX); mu2 = blur(bY)
    s1 = blur(bX * bX) - mu1 ** 2; s2 = blur(bY * bY) - mu2 ** 2
    s12 = blur(bX * bY) - mu1 * mu2
    cs_map = (2 * s12 + C2) / (s1 + s2 + C2)
    ssim_map = (2 * mu1 * mu2 + C1) / (mu1 ** 2 + mu2 ** 2 + C1) * cs_map
    b_per = ssim_map.mean((-2, -1))
    b_ssim = b_per.mean() if size_average else b_per.mean(1)
    return (f_ssim + b_ssim) / 2.0


# --------------------------------- main ----------------------------------------
if __name__ == "__main__":
    key = jax.random.PRNGKey(0)
    kx, ky, km = jax.random.split(key, 3)

    B, C, H, W = 2, CHANNEL, 16, 16
    P = 3  # part-mask channels (channel 0 = background, 1..P-1 = foreground parts)

    # inputs in [-1, 1] (forward rescales them to [0, 1])
    X = jax.random.uniform(kx, (B, C, H, W), jnp.float32, -1.0, 1.0)
    Y = jax.random.uniform(ky, (B, C, H, W), jnp.float32, -1.0, 1.0)
    # soft part mask (probabilities over parts per pixel)
    part_mask = jax.nn.softmax(jax.random.normal(km, (B, P, H, W), jnp.float32), axis=1)

    out = jax.jit(fpart_bssim_forward)(X, Y, part_mask)
    out = jax.block_until_ready(out)

    ref = _reference_forward(X, Y, part_mask)
    # MXU matmuls reassociate the f32 accumulation vs. the sequential reference;
    # tolerance is relaxed accordingly (math errors would be >> 1e-2).
    np.testing.assert_allclose(np.asarray(out), np.asarray(ref), rtol=2e-3, atol=1e-3)

    print("KERNEL_OK")
</pallas_src>

<mosaic_0001>
module attributes {stable_mosaic.version = 11 : i64} {
  func.func @_fused_kernel(%arg0: i32, %arg1: memref<1x9x256xf32, #tpu.memory_space<vmem>>, %arg2: memref<256x36xf32, #tpu.memory_space<vmem>>, %arg3: memref<1x1x1xf32, #tpu.memory_space<vmem>>, %arg4: memref<40x256xf32, #tpu.memory_space<vmem>>, %arg5: memref<40x256xf32, #tpu.memory_space<vmem>>) attributes {dimension_semantics = [#tpu.dimension_semantics<parallel>], iteration_bounds = array<i64: 2>, scalar_prefetch = 0 : i64, scratch_operands = 2 : i64, tpu.core_type = #tpu.core_type<tc>, window_params = [{transform_indices = @transform_0, window_bounds = array<i64: 1, 9, 256>}, {pipeline_mode = #tpu.pipeline_mode<synchronous>, transform_indices = @transform_1, window_bounds = array<i64: 256, 36>}, {transform_indices = @transform_2, window_bounds = array<i64: 1, 1, 1>}]} {
    %c0 = arith.constant 0 : index
    %c0_0 = arith.constant 0 : index
    %c0_1 = arith.constant 0 : index
    %0 = vector.load %arg1[%c0, %c0_0, %c0_1] : memref<1x9x256xf32, #tpu.memory_space<vmem>>, vector<1x3x256xf32>
    %1 = vector.shape_cast %0 : vector<1x3x256xf32> to vector<3x256xf32>
    %cst = arith.constant 1.000000e+00 : f32
    %2 = vector.broadcast %cst : f32 to vector<3x256xf32>
    %3 = arith.addf %1, %2 : vector<3x256xf32>
    %cst_2 = arith.constant 5.000000e-01 : f32
    %4 = vector.broadcast %cst_2 : f32 to vector<3x256xf32>
    %5 = arith.mulf %3, %4 : vector<3x256xf32>
    %c0_3 = arith.constant 0 : index
    %c3 = arith.constant 3 : index
    %c0_4 = arith.constant 0 : index
    %6 = vector.load %arg1[%c0_3, %c3, %c0_4] : memref<1x9x256xf32, #tpu.memory_space<vmem>>, vector<1x3x256xf32>
    %7 = vector.shape_cast %6 : vector<1x3x256xf32> to vector<3x256xf32>
    %cst_5 = arith.constant 1.000000e+00 : f32
    %8 = vector.broadcast %cst_5 : f32 to vector<3x256xf32>
    %9 = arith.addf %7, %8 : vector<3x256xf32>
    %cst_6 = arith.constant 5.000000e-01 : f32
    %10 = vector.broadcast %cst_6 : f32 to vector<3x256xf32>
    %11 = arith.mulf %9, %10 : vector<3x256xf32>
    %c0_7 = arith.constant 0 : index
    %c6 = arith.constant 6 : index
    %c0_8 = arith.constant 0 : index
    %12 = vector.load %arg1[%c0_7, %c6, %c0_8] : memref<1x9x256xf32, #tpu.memory_space<vmem>>, vector<1x1x256xf32>
    %13 = vector.shape_cast %12 : vector<1x1x256xf32> to vector<1x256xf32>
    %c0_9 = arith.constant 0 : index
    %c7 = arith.constant 7 : index
    %c0_10 = arith.constant 0 : index
    %14 = vector.load %arg1[%c0_9, %c7, %c0_10] : memref<1x9x256xf32, #tpu.memory_space<vmem>>, vector<1x2x256xf32>
    %15 = vector.shape_cast %14 : vector<1x2x256xf32> to vector<2x256xf32>
    %c0_11 = arith.constant 0 : index
    %c0_12 = arith.constant 0 : index
    %16 = vector.load %arg4[%c0_11, %c0_12] : memref<40x256xf32, #tpu.memory_space<vmem>>, vector<3x256xf32>
    tpu.vector_store %arg4[%c0_11, %c0_12], %5 {strides = array<i32>} : memref<40x256xf32, #tpu.memory_space<vmem>>, vector<3x256xf32>,
    %c8 = arith.constant 8 : index
    %c0_13 = arith.constant 0 : index
    %17 = vector.load %arg4[%c8, %c0_13] : memref<40x256xf32, #tpu.memory_space<vmem>>, vector<3x256xf32>
    tpu.vector_store %arg4[%c8, %c0_13], %11 {strides = array<i32>} : memref<40x256xf32, #tpu.memory_space<vmem>>, vector<3x256xf32>,
    %18 = arith.mulf %5, %5 : vector<3x256xf32>
    %c16 = arith.constant 16 : index
    %c0_14 = arith.constant 0 : index
    %19 = vector.load %arg4[%c16, %c0_14] : memref<40x256xf32, #tpu.memory_space<vmem>>, vector<3x256xf32>
    tpu.vector_store %arg4[%c16, %c0_14], %18 {strides = array<i32>} : memref<40x256xf32, #tpu.memory_space<vmem>>, vector<3x256xf32>,
    %20 = arith.mulf %11, %11 : vector<3x256xf32>
    %c24 = arith.constant 24 : index
    %c0_15 = arith.constant 0 : index
    %21 = vector.load %arg4[%c24, %c0_15] : memref<40x256xf32, #tpu.memory_space<vmem>>, vector<3x256xf32>
    tpu.vector_store %arg4[%c24, %c0_15], %20 {strides = array<i32>} : memref<40x256xf32, #tpu.memory_space<vmem>>, vector<3x256xf32>,
    %22 = arith.mulf %5, %11 : vector<3x256xf32>
    %c32 = arith.constant 32 : index
    %c0_16 = arith.constant 0 : index
    %23 = vector.load %arg4[%c32, %c0_16] : memref<40x256xf32, #tpu.memory_space<vmem>>, vector<3x256xf32>
    tpu.vector_store %arg4[%c32, %c0_16], %22 {strides = array<i32>} : memref<40x256xf32, #tpu.memory_space<vmem>>, vector<3x256xf32>,
    %c0_17 = arith.constant 0 : index
    %c0_18 = arith.constant 0 : index
    %24 = vector.load %arg4[%c0_17, %c0_18] : memref<40x256xf32, #tpu.memory_space<vmem>>, vector<40x256xf32>
    %cst_19 = arith.constant dense<0.000000e+00> : vector<2x40xf32>
    %25 = tpu.matmul %15, %24, %cst_19 {dimension_numbers = #tpu.dot_dimension_numbers<[1], [1], [0], [0], [0, 0, 1, 0], [], []>} : vector<2x256xf32>, vector<40x256xf32>, vector<2x40xf32> -> vector<2x40xf32>
    %cst_20 = arith.constant dense<0.000000e+00> : vector<2xf32>
    %26 = vector.multi_reduction <add>, %15, %cst_20 [1] : vector<2x256xf32> to vector<2xf32>
    %27 = vector.shape_cast %26 : vector<2xf32> to vector<2x1xf32>
    %cst_21 = arith.constant 9.99999997E-7 : f32
    %28 = vector.broadcast %cst_21 : f32 to vector<2x1xf32>
    %29 = arith.addf %27, %28 : vector<2x1xf32>
    %30 = tpu.reciprocal %29 : vector<2x1xf32> -> vector<2x1xf32>
    %31 = vector.extract_strided_slice %25 {offsets = [0, 0], sizes = [2, 3], strides = [1, 1]} : vector<2x40xf32> to vector<2x3xf32>
    %32 = vector.broadcast %30 : vector<2x1xf32> to vector<2x3xf32>
    %33 = arith.mulf %31, %32 : vector<2x3xf32>
    %34 = vector.extract_strided_slice %25 {offsets = [0, 8], sizes = [2, 3], strides = [1, 1]} : vector<2x40xf32> to vector<2x3xf32>
    %35 = vector.broadcast %30 : vector<2x1xf32> to vector<2x3xf32>
    %36 = arith.mulf %34, %35 : vector<2x3xf32>
    %37 = vector.extract_strided_slice %25 {offsets = [0, 16], sizes = [2, 3], strides = [1, 1]} : vector<2x40xf32> to vector<2x3xf32>
    %38 = vector.broadcast %30 : vector<2x1xf32> to vector<2x3xf32>
    %39 = arith.mulf %37, %38 : vector<2x3xf32>
    %40 = vector.extract_strided_slice %25 {offsets = [0, 24], sizes = [2, 3], strides = [1, 1]} : vector<2x40xf32> to vector<2x3xf32>
    %41 = vector.broadcast %30 : vector<2x1xf32> to vector<2x3xf32>
    %42 = arith.mulf %40, %41 : vector<2x3xf32>
    %43 = vector.extract_strided_slice %25 {offsets = [0, 32], sizes = [2, 3], strides = [1, 1]} : vector<2x40xf32> to vector<2x3xf32>
    %44 = vector.broadcast %30 : vector<2x1xf32> to vector<2x3xf32>
    %45 = arith.mulf %43, %44 : vector<2x3xf32>
    %46 = arith.mulf %33, %33 : vector<2x3xf32>
    %47 = arith.mulf %36, %36 : vector<2x3xf32>
    %48 = arith.mulf %33, %36 : vector<2x3xf32>
    %49 = arith.subf %39, %46 : vector<2x3xf32>
    %50 = arith.subf %42, %47 : vector<2x3xf32>
    %51 = arith.subf %45, %48 : vector<2x3xf32>
    %cst_22 = arith.constant 2.000000e+00 : f32
    %52 = vector.broadcast %cst_22 : f32 to vector<2x3xf32>
    %53 = arith.mulf %52, %48 : vector<2x3xf32>
    %cst_23 = arith.constant 9.99999974E-5 : f32
    %54 = vector.broadcast %cst_23 : f32 to vector<2x3xf32>
    %55 = arith.addf %53, %54 : vector<2x3xf32>
    %cst_24 = arith.constant 2.000000e+00 : f32
    %56 = vector.broadcast %cst_24 : f32 to vector<2x3xf32>
    %57 = arith.mulf %56, %51 : vector<2x3xf32>
    %cst_25 = arith.constant 8.99999984E-4 : f32
    %58 = vector.broadcast %cst_25 : f32 to vector<2x3xf32>
    %59 = arith.addf %57, %58 : vector<2x3xf32>
    %60 = arith.mulf %55, %59 : vector<2x3xf32>
    %61 = arith.addf %46, %47 : vector<2x3xf32>
    %cst_26 = arith.constant 9.99999974E-5 : f32
    %62 = vector.broadcast %cst_26 : f32 to vector<2x3xf32>
    %63 = arith.addf %61, %62 : vector<2x3xf32>
    %64 = arith.addf %49, %50 : vector<2x3xf32>
    %cst_27 = arith.constant 8.99999984E-4 : f32
    %65 = vector.broadcast %cst_27 : f32 to vector<2x3xf32>
    %66 = arith.addf %64, %65 : vector<2x3xf32>
    %67 = arith.mulf %63, %66 : vector<2x3xf32>
    %68 = tpu.reciprocal %67 : vector<2x3xf32> -> vector<2x3xf32>
    %69 = arith.mulf %60, %68 : vector<2x3xf32>
    %cst_28 = arith.constant dense<0.000000e+00> : vector<2xf32>
    %70 = vector.multi_reduction <add>, %69, %cst_28 [1] : vector<2x3xf32> to vector<2xf32>
    %71 = vector.shape_cast %70 : vector<2xf32> to vector<2x1xf32>
    %cst_29 = arith.constant 3.000000e+00 : f32
    %72 = vector.broadcast %cst_29 : f32 to vector<2x1xf32>
    %73 = arith.divf %71, %72 : vector<2x1xf32>
    %cst_30 = arith.constant dense<0.000000e+00> : vector<1xf32>
    %74 = vector.multi_reduction <add>, %73, %cst_30 [0] : vector<2x1xf32> to vector<1xf32>
    %75 = vector.shape_cast %74 : vector<1xf32> to vector<1x1xf32>
    %cst_31 = arith.constant 2.000000e+00 : f32
    %76 = vector.broadcast %cst_31 : f32 to vector<1x1xf32>
    %77 = arith.divf %75, %76 : vector<1x1xf32>
    %78 = vector.broadcast %13 : vector<1x256xf32> to vector<3x256xf32>
    %79 = arith.mulf %78, %5 : vector<3x256xf32>
    %80 = vector.broadcast %13 : vector<1x256xf32> to vector<3x256xf32>
    %81 = arith.mulf %80, %11 : vector<3x256xf32>
    %c0_32 = arith.constant 0 : index
    %c0_33 = arith.constant 0 : index
    %82 = vector.load %arg5[%c0_32, %c0_33] : memref<40x256xf32, #tpu.memory_space<vmem>>, vector<3x256xf32>
    tpu.vector_store %arg5[%c0_32, %c0_33], %79 {strides = array<i32>} : memref<40x256xf32, #tpu.memory_space<vmem>>, vector<3x256xf32>,
    %c8_34 = arith.constant 8 : index
    %c0_35 = arith.constant 0 : index
    %83 = vector.load %arg5[%c8_34, %c0_35] : memref<40x256xf32, #tpu.memory_space<vmem>>, vector<3x256xf32>
    tpu.vector_store %arg5[%c8_34, %c0_35], %81 {strides = array<i32>} : memref<40x256xf32, #tpu.memory_space<vmem>>, vector<3x256xf32>,
    %84 = arith.mulf %79, %79 : vector<3x256xf32>
    %c16_36 = arith.constant 16 : index
    %c0_37 = arith.constant 0 : index
    %85 = vector.load %arg5[%c16_36, %c0_37] : memref<40x256xf32, #tpu.memory_space<vmem>>, vector<3x256xf32>
    tpu.vector_store %arg5[%c16_36, %c0_37], %84 {strides = array<i32>} : memref<40x256xf32, #tpu.memory_space<vmem>>, vector<3x256xf32>,
    %86 = arith.mulf %81, %81 : vector<3x256xf32>
    %c24_38 = arith.constant 24 : index
    %c0_39 = arith.constant 0 : index
    %87 = vector.load %arg5[%c24_38, %c0_39] : memref<40x256xf32, #tpu.memory_space<vmem>>, vector<3x256xf32>
    tpu.vector_store %arg5[%c24_38, %c0_39], %86 {strides = array<i32>} : memref<40x256xf32, #tpu.memory_space<vmem>>, vector<3x256xf32>,
    %88 = arith.mulf %79, %81 : vector<3x256xf32>
    %c32_40 = arith.constant 32 : index
    %c0_41 = arith.constant 0 : index
    %89 = vector.load %arg5[%c32_40, %c0_41] : memref<40x256xf32, #tpu.memory_space<vmem>>, vector<3x256xf32>
    tpu.vector_store %arg5[%c32_40, %c0_41], %88 {strides = array<i32>} : memref<40x256xf32, #tpu.memory_space<vmem>>, vector<3x256xf32>,
    %c0_42 = arith.constant 0 : index
    %c0_43 = arith.constant 0 : index
    %90 = vector.load %arg5[%c0_42, %c0_43] : memref<40x256xf32, #tpu.memory_space<vmem>>, vector<40x256xf32>
    %c0_44 = arith.constant 0 : index
    %c0_45 = arith.constant 0 : index
    %91 = vector.load %arg2[%c0_44, %c0_45] : memref<256x36xf32, #tpu.memory_space<vmem>>, vector<256x36xf32>
    %cst_46 = arith.constant dense<0.000000e+00> : vector<40x36xf32>
    %92 = tpu.matmul %90, %91, %cst_46 {dimension_numbers = #tpu.dot_dimension_numbers<[1], [0], [0], [1], [0, 0, 1, 1], [], []>} : vector<40x256xf32>, vector<256x36xf32>, vector<40x36xf32> -> vector<40x36xf32>
    %93 = vector.extract_strided_slice %92 {offsets = [0, 0], sizes = [3, 36], strides = [1, 1]} : vector<40x36xf32> to vector<3x36xf32>
    %94 = vector.extract_strided_slice %92 {offsets = [8, 0], sizes = [3, 36], strides = [1, 1]} : vector<40x36xf32> to vector<3x36xf32>
    %95 = vector.extract_strided_slice %92 {offsets = [16, 0], sizes = [3, 36], strides = [1, 1]} : vector<40x36xf32> to vector<3x36xf32>
    %96 = vector.extract_strided_slice %92 {offsets = [24, 0], sizes = [3, 36], strides = [1, 1]} : vector<40x36xf32> to vector<3x36xf32>
    %97 = vector.extract_strided_slice %92 {offsets = [32, 0], sizes = [3, 36], strides = [1, 1]} : vector<40x36xf32> to vector<3x36xf32>
    %98 = arith.mulf %93, %93 : vector<3x36xf32>
    %99 = arith.mulf %94, %94 : vector<3x36xf32>
    %100 = arith.mulf %93, %94 : vector<3x36xf32>
    %101 = arith.subf %95, %98 : vector<3x36xf32>
    %102 = arith.subf %96, %99 : vector<3x36xf32>
    %103 = arith.subf %97, %100 : vector<3x36xf32>
    %cst_47 = arith.constant 2.000000e+00 : f32
    %104 = vector.broadcast %cst_47 : f32 to vector<3x36xf32>
    %105 = arith.mulf %104, %100 : vector<3x36xf32>
    %cst_48 = arith.constant 9.99999974E-5 : f32
    %106 = vector.broadcast %cst_48 : f32 to vector<3x36xf32>
    %107 = arith.addf %105, %106 : vector<3x36xf32>
    %cst_49 = arith.constant 2.000000e+00 : f32
    %108 = vector.broadcast %cst_49 : f32 to vector<3x36xf32>
    %109 = arith.mulf %108, %103 : vector<3x36xf32>
    %cst_50 = arith.constant 8.99999984E-4 : f32
    %110 = vector.broadcast %cst_50 : f32 to vector<3x36xf32>
    %111 = arith.addf %109, %110 : vector<3x36xf32>
    %112 = arith.mulf %107, %111 : vector<3x36xf32>
    %113 = arith.addf %98, %99 : vector<3x36xf32>
    %cst_51 = arith.constant 9.99999974E-5 : f32
    %114 = vector.broadcast %cst_51 : f32 to vector<3x36xf32>
    %115 = arith.addf %113, %114 : vector<3x36xf32>
    %116 = arith.addf %101, %102 : vector<3x36xf32>
    %cst_52 = arith.constant 8.99999984E-4 : f32
    %117 = vector.broadcast %cst_52 : f32 to vector<3x36xf32>
    %118 = arith.addf %116, %117 : vector<3x36xf32>
    %119 = arith.mulf %115, %118 : vector<3x36xf32>
    %120 = tpu.reciprocal %119 : vector<3x36xf32> -> vector<3x36xf32>
    %121 = arith.mulf %112, %120 : vector<3x36xf32>
    %cst_53 = arith.constant dense<0.000000e+00> : vector<3xf32>
    %122 = vector.multi_reduction <add>, %121, %cst_53 [1] : vector<3x36xf32> to vector<3xf32>
    %123 = vector.shape_cast %122 : vector<3xf32> to vector<3x1xf32>
    %cst_54 = arith.constant 3.600000e+01 : f32
    %124 = vector.broadcast %cst_54 : f32 to vector<3x1xf32>
    %125 = arith.divf %123, %124 : vector<3x1xf32>
    %cst_55 = arith.constant dense<0.000000e+00> : vector<1xf32>
    %126 = vector.multi_reduction <add>, %125, %cst_55 [0] : vector<3x1xf32> to vector<1xf32>
    %127 = vector.shape_cast %126 : vector<1xf32> to vector<1x1xf32>
    %cst_56 = arith.constant 3.000000e+00 : f32
    %128 = vector.broadcast %cst_56 : f32 to vector<1x1xf32>
    %129 = arith.divf %127, %128 : vector<1x1xf32>
    %130 = arith.addf %77, %129 : vector<1x1xf32>
    %cst_57 = arith.constant 5.000000e-01 : f32
    %131 = vector.broadcast %cst_57 : f32 to vector<1x1xf32>
    %132 = arith.mulf %130, %131 : vector<1x1xf32>
    %c0_58 = arith.constant 0 : index
    %c0_59 = arith.constant 0 : index
    %c0_60 = arith.constant 0 : index
    %133 = vector.load %arg3[%c0_58, %c0_59, %c0_60] : memref<1x1x1xf32, #tpu.memory_space<vmem>>, vector<1x1x1xf32>
    %134 = vector.shape_cast %133 : vector<1x1x1xf32> to vector<1x1xf32>
    %135 = vector.shape_cast %132 : vector<1x1xf32> to vector<1x1x1xf32>
    tpu.vector_store %arg3[%c0_58, %c0_59, %c0_60], %135 {strides = array<i32>} : memref<1x1x1xf32, #tpu.memory_space<vmem>>, vector<1x1x1xf32>,
    return
  }
  func.func @transform_0(%arg0: i32) -> (i32, i32, i32) {
    %c0_i32 = arith.constant 0 : i32
    %c0_i32_0 = arith.constant 0 : i32
    %c0_i32_1 = arith.constant 0 : i32
    return %arg0, %c0_i32, %c0_i32_0 : i32, i32, i32
  }
  func.func @transform_1(%arg0: i32) -> (i32, i32) {
    %c0_i32 = arith.constant 0 : i32
    %c0_i32_0 = arith.constant 0 : i32
    %c0_i32_1 = arith.constant 0 : i32
    return %c0_i32, %c0_i32_0 : i32, i32
  }
  func.func @transform_2(%arg0: i32) -> (i32, i32, i32) {
    %c0_i32 = arith.constant 0 : i32
    %c0_i32_0 = arith.constant 0 : i32
    %c0_i32_1 = arith.constant 0 : i32
    return %arg0, %c0_i32, %c0_i32_0 : i32, i32, i32
  }
}

</mosaic_0001>

<bundles_post_ra>
// kernel: fpart_bssim_forward.1
= control target key start
LH: loop header
LB: loop body
LE: loop exit
PB: predicated region body
PF: predicated region fallthrough
CT: control target
= control target key end

     0   :  { %s726_s9 = smov 0   ;;  %s930_s0 = inlined_call_operand.vmem [shape: f32[2,9,256], index: 0, kind: input, shape index: {}]   ;;  %s931_s1 = inlined_call_operand.vmem [shape: f32[256,36], index: 1, kind: input, shape index: {}]   ;;  %s932_s2 = inlined_call_operand.vmem [shape: f32[2,1,1], index: 2, kind: output, shape index: {}]  }
   0x1 LB: > { %s619_s10 = sadd.s32 4294967295, %s704_s9   ;;  %p623_p0 = scmp.ge.s32.totalorder %s704_s9, 1  ;;  %s704_s9 = sphi %s726_s9, %s12_s9  }
   0x2   : > { %p112_p1 = scmp.lt.s32.totalorder %s704_s9, 3 }
   0x4   : > { %p113_p2 = pnand %p623_p0, %p112_p1 }
   0x5   : > { %p132_p3 = scmp.lt.s32.totalorder (!%p113_p2), %s619_s10, 1  ;;  %s706_s27 = smov (!%p113_p2), 16  }
   0x6   : > { %116 = sbr.rel (%p113_p2) target bundleno = 778 (0x30a), region = 28  ;;  %s707_s28 = smov (!%p113_p2), 120  }
   0x7   : > { %s708_s29 = smov (!%p113_p2), 32   ;;  %s709_s30 = smov (!%p113_p2), 112  }
   0x8   : > { %s710_s3 = smov (!%p113_p2), 96  }
   0xb   : > { %s934_s10 = smov (!%p132_p3, %s619_s10), 1  ;;  %vm279_vm0 = vcmask 1047559   ;;  %vm200_vm1 = vcmask 1040384   ;;  %v444_v48 = vld [vmem:[%s931_s1 + $0xf8] sm:$0xff]  ;;  %v443_v50 = vld [vmem:[%s931_s1 + $0xf0] sm:$0xff]  ;;  %v361_v51 = vlaneseq  ;;  %v442_v53 = vld [vmem:[%s931_s1 + $0xe8] sm:$0xff] }
   0xc   : > { %s629_s11 = sshll.u32 %s934_s10, 5  ;;  %v428_v49 = vld [vmem:[%s931_s1 + $0x78] sm:$0xff]  ;;  %630 = vmatprep.subr.mxu1 %v444_v48  ;;  %v427_v52 = vld [vmem:[%s931_s1 + $0x70] sm:$0xff]  ;;  %v426_v54 = vld [vmem:[%s931_s1 + $0x68] sm:$0xff]  ;;  %vm553_vm2 = vcmask 288768   ;;  %vm344_vm3 = vcmask 17408   ;;  %s139_s6 = scalar_lea.vmem %s932_s2, %s934_s10 }
   0xd   : > { %s740_s14 = scalar_lea.vmem %s930_s0, %s629_s11  ;;  %631 = vmatpush3.msra.mxu1 %v428_v49  ;;  %v362_v55 = vshrl.u32 %v361_v51, 7  ;;  %v441_v56 = vld [vmem:[%s931_s1 + $0xe0] sm:$0xff]  ;;  %v440_v58 = vld [vmem:[%s931_s1 + $0xd8] sm:$0xff]  ;;  %v439_v62 = vld [vmem:[%s931_s1 + $0xd0] sm:$0xff]  ;;  %vm559_vm4 = vcmask 1042432   ;;  %vm350_vm5 = vcmask 1041408  }
   0xe   : > { %v141_v0 = vld [vmem:[%s740_s14 + $0x8] sm:$0x7]  ;;  %v147_v1 = vld [vmem:[%s740_s14 + $0x8] sm:$0x38]  ;;  %v140_v2 = vld [vmem:[%s740_s14] sm:$0x7]  ;;  %632 = vmatprep.subr.mxu1 %v443_v50 }
   0xf   : > { %v143_v3 = vadd.f32 1.0, %v141_v0  ;;  %v149_v4 = vadd.f32 1.0, %v147_v1  ;;  %v142_v5 = vadd.f32 1.0, %v140_v2  ;;  %v146_v6 = vld [vmem:[%s740_s14] sm:$0x38]  ;;  %633 = vmatpush3.msra.mxu1 %v427_v52  ;;  %v424_v59 = vld [vmem:[%s931_s1 + $0x58] sm:$0xff] }
  0x10   : > { %v148_v7 = vadd.f32 1.0, %v146_v6  ;;  %v155_v8 = vld [vmem:[%s740_s14 + $0x8] sm:$0x80]  ;;  %v157_v9 = vld [vmem:[%s740_s14 + $0x18] sm:$0x1]  ;;  %634 = vmatprep.subr.mxu1 %v442_v53  ;;  %v425_v57 = vld [vmem:[%s931_s1 + $0x60] sm:$0xff] }
  0x11   : > { %v748_v10 = vmul.f32 0.5, %v143_v3  ;;  %v750_v11 = vmul.f32 0.5, %v149_v4  ;;  %v752_v12 = vmul.f32 0.5, %v142_v5  ;;  %v204_v13 = vrot.slane %v155_v8, 7  ;;  %v154_v14 = vld [vmem:[%s740_s14] sm:$0x80]  ;;  %635 = vmatpush3.msra.mxu1 %v426_v54 }
  0x12   : > { %v755_v15 = vmul.f32 0.5, %v148_v7  ;;  %v205_v16 = vrot.slane %v157_v9, 7  ;;  %v280_v17 = vsel %vm279_vm0, %v154_v14, 0.0  ;;  %v156_v25 = vld [vmem:[%s740_s14 + $0x10] sm:$0x1]  ;;  %v281_v28 = vsel %vm279_vm0, %v155_v8, 0.0  ;;  %636 = vmatprep.subr.mxu1 %v441_v56 }
  0x13   : > { %v163_v18 = vrot.slane %v750_v11, 3  ;;  %159 = vst [vmem:[#allocation2] sm:$0x7] %v748_v10  ;;  %158 = vst [vmem:[#allocation2 + $0x30] sm:$0x7] %v752_v12  ;;  %v173_v19 = vmul.f32 %v750_v11, %v750_v11  ;;  %v169_v20 = vmul.f32 %v748_v10, %v748_v10  ;;  %v168_v21 = vmul.f32 %v752_v12, %v752_v12  ;;  %v423_v63 = vld [vmem:[%s931_s1 + $0x50] sm:$0xff] }
  0x14   : > { %v162_v22 = vrot.slane %v755_v15, 3  ;;  %v172_v23 = vmul.f32 %v755_v15, %v755_v15  ;;  %v206_v24 = vsel %vm200_vm1, %v204_v13, %v205_v16  ;;  %v285_v29 = vsel %vm200_vm1, %v156_v25, 0.0  ;;  %637 = vmatpush3.msra.mxu1 %v425_v57  ;;  %v438_v0 = vld [vmem:[%s931_s1 + $0xc8] sm:$0xff]  ;;  %v437_v5 = vld [vmem:[%s931_s1 + $0xc0] sm:$0xff] }
  0x15   : > { %v183_v26 = vmul.f32 %v163_v18, %v748_v10  ;;  %167 = vst [vmem:[#allocation2 + $0x10] sm:$0x7] %v163_v18  ;;  %v177_v27 = vrot.slane %v173_v19, 3  ;;  %171 = vst [vmem:[#allocation2 + $0x28] sm:$0x7] %v169_v20  ;;  %273 = vmatprep.mubr.f32.mxu0 %v206_v24  ;;  %v282_v32 = vadd.f32 %v281_v28, %v280_v17  ;;  %v286_v33 = vsel %vm200_vm1, %v157_v9, 0.0 }
  0x16   : > { %170 = vst [vmem:[#allocation2 + $0x48] sm:$0x7] %v168_v21  ;;  %v182_v30 = vmul.f32 %v162_v22, %v752_v12  ;;  %166 = vst [vmem:[#allocation2 + $0x18] sm:$0x7] %v162_v22  ;;  %v176_v31 = vrot.slane %v172_v23, 3  ;;  %v287_v34 = vadd.f32 %v286_v33, %v285_v29  ;;  %v201_v44 = vrot.slane %v154_v14, 7  ;;  %638 = vmatprep.subr.mxu1 %v440_v58 }
  0x17   : > { %185 = vst [vmem:[#allocation2 + $0x38] sm:$0x7] %v183_v26  ;;  %181 = vst [vmem:[#allocation2 + $0x20] sm:$0x7] %v177_v27  ;;  %283 = vadd.xlane.f32.xlu0 %v282_v32  ;;  %v202_v45 = vrot.slane %v156_v25, 7  ;;  %v367_v60 = vsub.s32 1, %v362_v55  ;;  %639 = vmatpush3.msra.mxu1 %v424_v59 }
  0x18   : > { %184 = vst [vmem:[#allocation2 + $0x40] sm:$0x7] %v182_v30  ;;  %180 = vst [vmem:[#allocation2 + $0x8] sm:$0x7] %v176_v31  ;;  %v363_v61 = vsub.s32 0, %v362_v55  ;;  %640 = vmatprep.subr.mxu1 %v439_v62  ;;  %v422_v2 = vld [vmem:[%s931_s1 + $0x48] sm:$0xff] }
  0x19   : > { %v203_v47 = vsel %vm200_vm1, %v201_v44, %v202_v45  ;;  %v626_v1 = vld [vmem:[%s740_s14 + $0x6] ss:$8 sm:$0x3]  ;;  %641 = vmatpush3.msra.mxu1 %v423_v63  ;;  %v436_v14 = vld [vmem:[%s931_s1 + $0xb8] sm:$0xff]  ;;  %v435_v17 = vld [vmem:[%s931_s1 + $0xb0] sm:$0xff]  ;;  %vm570_vm6 = vcmask 0  }
  0x1a   : > { %v187_v43 = vld [vmem:[#allocation2] sm:$0xff]  ;;  %v186_v46 = vld [vmem:[#allocation2 + $0x30] sm:$0xff]  ;;  %v368_v3 = vrot.slane %v626_v1, %v367_v60  ;;  %v364_v4 = vrot.slane %v626_v1, %v363_v61  ;;  %642 = vmatprep.subr.mxu1 %v438_v0  ;;  %v434_v21 = vld [vmem:[%s931_s1 + $0xa8] sm:$0xff] }
  0x1b   : > { %288 = vadd.xlane.f32.xlu0 %v287_v34  ;;  %v421_v6 = vld [vmem:[%s931_s1 + $0x40] sm:$0xff]  ;;  %643 = vmatpush3.msra.mxu1 %v422_v2  ;;  %v419_v20 = vld [vmem:[%s931_s1 + $0x30] sm:$0xff]  ;;  %v418_v24 = vld [vmem:[%s931_s1 + $0x28] sm:$0xff] }
  0x1c   : > { %v191_v39 = vld [vmem:[#allocation2 + $0x28] sm:$0xff]  ;;  %v189_v41 = vld [vmem:[#allocation2 + $0x10] sm:$0xff]  ;;  %v828_v7 = vmul.f32 %v368_v3, %v748_v10  ;;  %v831_v8 = vmul.f32 %v364_v4, %v752_v12  ;;  %v834_v9 = vmul.f32 %v368_v3, %v750_v11  ;;  %v837_v13 = vmul.f32 %v364_v4, %v755_v15  ;;  %644 = vmatprep.subr.mxu1 %v437_v5  ;;  %v420_v10 = vld [vmem:[%s931_s1 + $0x38] sm:$0xff] }
  0x1d   : > { %v190_v40 = vld [vmem:[#allocation2 + $0x48] sm:$0xff]  ;;  %v188_v42 = vld [vmem:[#allocation2 + $0x18] sm:$0xff]  ;;  %645 = vmatpush3.msra.mxu1 %v421_v6  ;;  %v433_v25 = vld [vmem:[%s931_s1 + $0xa0] sm:$0xff] }
  0x1e   : > { %v195_v35 = vld [vmem:[#allocation2 + $0x38] sm:$0xff]  ;;  %v193_v36 = vld [vmem:[#allocation2 + $0x20] sm:$0xff]  ;;  %376 = vst [vmem:[#allocation3] sm:$0x7] %v828_v7  ;;  %375 = vst [vmem:[#allocation3 + $0x48] sm:$0x7] %v831_v8  ;;  %v386_v15 = vmul.f32 %v828_v7, %v828_v7  ;;  %v385_v16 = vmul.f32 %v831_v8, %v831_v8  ;;  %v390_v18 = vmul.f32 %v834_v9, %v834_v9  ;;  %646 = vmatprep.subr.mxu1 %v436_v14 }
  0x1f   : > { %231 = vmatprep.subr.mxu0 %v195_v35  ;;  %v194_v37 = vld [vmem:[#allocation2 + $0x40] sm:$0xff]  ;;  %v192_v38 = vld [vmem:[#allocation2 + $0x8] sm:$0xff]  ;;  %v380_v11 = vrot.slane %v834_v9, 3  ;;  %v379_v12 = vrot.slane %v837_v13, 3  ;;  %v389_v19 = vmul.f32 %v837_v13, %v837_v13  ;;  %647 = vmatpush3.msra.mxu1 %v420_v10  ;;  %v432_v27 = vld [vmem:[%s931_s1 + $0x98] sm:$0xff] }
  0x20   : > { %232 = vmatpush1.xpose.msra.mxu0 %v194_v37  ;;  %388 = vst [vmem:[#allocation3 + $0x8] sm:$0x7] %v386_v15  ;;  %387 = vst [vmem:[#allocation3 + $0x38] sm:$0x7] %v385_v16  ;;  %v394_v22 = vrot.slane %v390_v18, 3  ;;  %648 = vmatprep.subr.mxu1 %v435_v17  ;;  %v417_v26 = vld [vmem:[%s931_s1 + $0x20] sm:$0xff] }
  0x21   : > { %233 = vmatprep.subr.mxu0 %v193_v36  ;;  %384 = vst [vmem:[#allocation3 + $0x40] sm:$0x7] %v380_v11  ;;  %383 = vst [vmem:[#allocation3 + $0x10] sm:$0x7] %v379_v12  ;;  %v393_v23 = vrot.slane %v389_v19, 3  ;;  %649 = vmatpush3.msra.mxu1 %v419_v20  ;;  %v416_v29 = vld [vmem:[%s931_s1 + $0x18] sm:$0xff]  ;;  %v400_v49 = vmul.f32 %v380_v11, %v828_v7  ;;  %v399_v50 = vmul.f32 %v379_v12, %v831_v8 }
  0x22   : > { %398 = vst [vmem:[#allocation3 + $0x18] sm:$0x7] %v394_v22  ;;  %650 = vmatprep.subr.mxu1 %v434_v21  ;;  %v431_v30 = vld [vmem:[%s931_s1 + $0x90] sm:$0xff]  ;;  %v430_v32 = vld [vmem:[%s931_s1 + $0x88] sm:$0xff]  ;;  %v429_v34 = vld [vmem:[%s931_s1 + $0x80] sm:$0xff] }
  0x23   : > { %397 = vst [vmem:[#allocation3 + $0x30] sm:$0x7] %v393_v23  ;;  %651 = vmatpush3.msra.mxu1 %v418_v24  ;;  %v415_v31 = vld [vmem:[%s931_s1 + $0x10] sm:$0xff]  ;;  %v414_v33 = vld [vmem:[%s931_s1 + $0x8] sm:$0xff]  ;;  %v413_v35 = vld [vmem:[%s931_s1] sm:$0xff] }
  0x24   : > { %234 = vmatpush1.xpose.msra.mxu0 %v192_v38  ;;  %652 = vmatprep.subr.mxu1 %v433_v25  ;;  %402 = vst [vmem:[#allocation3 + $0x20] sm:$0x7] %v400_v49  ;;  %401 = vst [vmem:[#allocation3 + $0x28] sm:$0x7] %v399_v50 }
  0x25   : > { %235 = vmatprep.subr.mxu0 %v191_v39  ;;  %v404_v28 = vld [vmem:[#allocation3] sm:$0xff]  ;;  %653 = vmatpush3.msra.mxu1 %v417_v26  ;;  %v403_v36 = vld [vmem:[#allocation3 + $0x48] sm:$0xff] }
  0x26   : > { %509 = vmatprep.mubr.f32.mxu1 %v404_v28  ;;  %654 = vmatprep.subr.mxu1 %v432_v27 }
  0x27   : > { %655 = vmatpush3.msra.mxu1 %v416_v29  ;;  %v408_v39 = vld [vmem:[#allocation3 + $0x8] sm:$0xff] }
  0x28   : > { %236 = vmatpush1.xpose.msra.mxu0 %v190_v40  ;;  %656 = vmatprep.subr.mxu1 %v431_v30  ;;  %v406_v37 = vld [vmem:[#allocation3 + $0x40] sm:$0xff]  ;;  %v405_v38 = vld [vmem:[#allocation3 + $0x10] sm:$0xff]  ;;  %v407_v40 = vld [vmem:[#allocation3 + $0x38] sm:$0xff] }
  0x29   : > { %237 = vmatprep.subr.mxu0 %v189_v41  ;;  %657 = vmatpush3.msra.mxu1 %v415_v31  ;;  %v410_v41 = vld [vmem:[#allocation3 + $0x18] sm:$0xff] }
  0x2a   : > { %658 = vmatprep.subr.mxu1 %v430_v32 }
  0x2b   : > { %659 = vmatpush3.msra.mxu1 %v414_v33  ;;  %v412_v58 = vld [vmem:[#allocation3 + $0x20] sm:$0xff]  ;;  %v411_v59 = vld [vmem:[#allocation3 + $0x28] sm:$0xff] }
  0x2c   : > { %238 = vmatpush1.xpose.msra.mxu0 %v188_v42  ;;  %660 = vmatprep.subr.mxu1 %v429_v34  ;;  %v409_v42 = vld [vmem:[#allocation3 + $0x30] sm:$0xff] }
  0x2d   : > { %239 = vmatprep.subr.mxu0 %v187_v43  ;;  %661 = vmatpush3.msra.mxu1 %v413_v35 }
  0x2e   : > { %510 = vmatmul.mubr.f32.vlgmr.msra.gmra.mxu1 %v403_v36 }
  0x2f   : > { %514 = vmatprep.mubr.f32.mxu1 %v406_v37 }
  0x30   : > { %240 = vmatpush1.xpose.msra.mxu0 %v186_v46 }
  0x32   : > { %515 = vmatmul.mubr.f32.gmra.mxu1 %v405_v38 }
  0x33   : > { %274 = vmatmul.mubr.f32.vlgmr.msra.gmra.mxu0 %v203_v47  ;;  %519 = vmatprep.mubr.f32.mxu1 %v408_v39 }
  0x36   : > { %520 = vmatmul.mubr.f32.gmra.mxu1 %v407_v40 }
  0x37   : > { %524 = vmatprep.mubr.f32.mxu1 %v410_v41 }
  0x3a   : > { %525 = vmatmul.mubr.f32.gmra.mxu1 %v409_v42 }
  0x3b   : > { %529 = vmatprep.mubr.f32.mxu1 %v412_v58 }
  0x3e   : > { %530 = vmatmul.mubr.f32.gmra.mxu1 %v411_v59 }
  0xa0   : > { %v284_v43 = vpop.xlane.xlu0 %283 }
  0xa1   : > { %v290_v45 = vadd.f32 1e-06, %v284_v43 }
  0xa3   : > { %690 = vrcp.f32 %v290_v45 }
  0xa4   : > { %v289_v44 = vpop.xlane.xlu0 %288 }
  0xa5   : > { %v291_v46 = vadd.f32 1e-06, %v289_v44 }
  0xa7   : > { %692 = vrcp.f32 %v291_v46 }
  0xb0   : > { %v691_v47 = vpop.eup %690 }
  0xb1   : > { %v296_v51 = vrot.slane %v691_v47, 7 }
  0xb4   : > { %v693_v48 = vpop.eup %692 }
  0xb5   : > { %v297_v52 = vrot.slane %v693_v48, 7 }
  0xb7   : > { %v298_v54 = vsel %vm200_vm1, %v296_v51, %v297_v52 }
  0xee   : > { %v662_v0 = vpop.f32.mrf.mxu1 }
  0xf0   : > { %v663_v1 = vpop.f32.mrf.mxu1 }
  0xf1   : > { %v664_v7 = vadd.f32 %v663_v1, %v662_v0 }
  0xf2   : > { %v665_v2 = vpop.f32.mrf.mxu1 }
  0xf3   : > { %v275_v53 = vpop.f32.mrf.mxu0  ;;  %v535_v13 = vmul.f32 %v664_v7, %v664_v7 }
  0xf4   : > { %v910_v55 = vmul.f32 %v298_v54, %v275_v53  ;;  %v666_v3 = vpop.f32.mrf.mxu1 }
  0xf5   : > { %v277_v56 = vpop.f32.mrf.mxu0  ;;  %v667_v8 = vadd.f32 %v666_v3, %v665_v2 }
  0xf6   : > { %v914_v57 = vmul.f32 %v910_v55, %v910_v55  ;;  %v668_v4 = vpop.f32.mrf.mxu1 }
  0xf7   : > { %v536_v14 = vmul.f32 %v667_v8, %v667_v8  ;;  %v537_v22 = vmul.f32 %v667_v8, %v664_v7 }
  0xf8   : > { %308 = vrot.lane.b32.xlu1 %v914_v57, %s706_s27  ;;  %v669_v5 = vpop.f32.mrf.mxu1 }
  0xf9   : > { %v670_v10 = vadd.f32 %v669_v5, %v668_v4  ;;  %v546_v16 = vadd.f32 %v536_v14, %v535_v13  ;;  %v541_v24 = vmul.f32 2.0, %v537_v22 }
  0xfa   : > { %v671_v6 = vpop.f32.mrf.mxu1 }
  0xfb   : > { %v538_v12 = vsub.f32 %v670_v10, %v535_v13  ;;  %v547_v18 = vadd.f32 0.0001, %v546_v16  ;;  %v542_v27 = vadd.f32 0.0001, %v541_v24 }
  0xfc   : > { %303 = vrot.lane.b32.xlu1 %v910_v55, %s707_s28  ;;  %v672_v9 = vpop.f32.mrf.mxu1 }
  0xfd   : > { %v673_v11 = vadd.f32 %v672_v9, %v671_v6 }
  0xfe   : > { %v674_v21 = vpop.f32.mrf.mxu1 }
  0xff   : > { %v539_v15 = vsub.f32 %v673_v11, %v536_v14 }
 0x100   : > { %v675_v23 = vpop.f32.mrf.mxu1 }
 0x101   : > { %v548_v17 = vadd.f32 %v539_v15, %v538_v12  ;;  %v676_v25 = vadd.f32 %v675_v23, %v674_v21 }
 0x103   : > { %v549_v19 = vadd.f32 0.0009, %v548_v17  ;;  %v540_v26 = vsub.f32 %v676_v25, %v537_v22 }
 0x105   : > { %v550_v20 = vmul.f32 %v549_v19, %v547_v18  ;;  %v543_v28 = vmul.f32 2.0, %v540_v26 }
 0x107   : > { %694 = vrcp.f32 %v550_v20  ;;  %v544_v29 = vadd.f32 0.0009, %v543_v28 }
 0x109   : > { %v545_v31 = vmul.f32 %v544_v29, %v542_v27 }
 0x114   : > { %v695_v30 = vpop.eup %694 }
 0x115   : > { %v552_v32 = vmul.f32 %v695_v30, %v545_v31 }
 0x117   : > { %v554_v33 = vsel %vm553_vm2, %v552_v32, 0.0 }
 0x16a   : > { %v309_v60 = vpop.permute.xlu1 %308 }
 0x16b   : > { %v311_v61 = vsub.f32 %v910_v55, %v309_v60 }
 0x16d   : > { %332 = vrot.lane.b32.xlu0 %v311_v61, %s707_s28 }
 0x16e   : > { %v304_v62 = vpop.permute.xlu1 %303 }
 0x16f   : > { %v306_v63 = vmul.f32 %v304_v62, %v910_v55 }
 0x171   : > { %313 = vrot.lane.b32.xlu1 %v306_v63, %s708_s29  ;;  %v317_v46 = vmul.f32 2.0, %v306_v63 }
 0x173   : > { %v318_v48 = vadd.f32 0.0001, %v317_v46 }
 0x175   : > { %326 = vrot.lane.b32.xlu1 %v914_v57, %s707_s28 }
 0x18c   : > { %555 = vadd.xlane.f32.xlu0 %v554_v33 }
 0x1df   : > { %v333_v34 = vpop.permute.xlu0 %332 }
 0x1e0   : > { %v335_v35 = vadd.f32 %v333_v34, %v311_v61 }
 0x1e2   : > { %v336_v36 = vadd.f32 0.0009, %v335_v35 }
 0x1e3   : > { %v314_v37 = vpop.permute.xlu1 %313 }
 0x1e4   : > { %v316_v38 = vsub.f32 %v910_v55, %v314_v37  ;;  %338 = vrot.lane.b32.xlu1 %v336_v36, %s709_s30 }
 0x1e6   : > { %v319_v39 = vmul.f32 2.0, %v316_v38 }
 0x1e7   : > { %v327_v41 = vpop.permute.xlu1 %326 }
 0x1e8   : > { %v320_v40 = vadd.f32 0.0009, %v319_v39  ;;  %v329_v42 = vadd.f32 %v327_v41, %v914_v57 }
 0x1ea   : > { %322 = vrot.lane.b32.xlu1 %v320_v40, %s710_s3  ;;  %v330_v43 = vadd.f32 0.0001, %v329_v42 }
 0x215   : > { %v556_v53 = vpop.xlane.xlu0 %555 }
 0x216   : > { %v558_v54 = vmul.f32 0.027777778, %v556_v53 }
 0x218   : > { %v560_v55 = vsel %vm559_vm4, %v558_v54, 0.0 }
 0x219   : > { %v561_v56 = vrot.slane %v560_v55, 4 }
 0x21b   : > { %v562_v58 = vadd.f32 %v561_v56, %v560_v55 }
 0x21d   : > { %v563_v57 = vrot.slane %v562_v58, 2 }
 0x21f   : > { %v564_v62 = vadd.f32 %v563_v57, %v562_v58 }
 0x221   : > { %v565_v1 = vrot.slane %v564_v62, 1 }
 0x223   : > { %v566_v4 = vadd.f32 %v565_v1, %v564_v62 }
 0x225   : > { %v567_v7 = vmul.f32 0.33333334, %v566_v4 }
 0x256   : > { %v339_v44 = vpop.permute.xlu1 %338 }
 0x257   : > { %v341_v45 = vmul.f32 %v339_v44, %v330_v43 }
 0x259   : > { %696 = vrcp.f32 %v341_v45 }
 0x25c   : > { %v323_v47 = vpop.permute.xlu1 %322 }
 0x25d   : > { %v325_v49 = vmul.f32 %v323_v47, %v318_v48 }
 0x266   : > { %v697_v50 = vpop.eup %696 }
 0x267   : > { %v343_v51 = vmul.f32 %v697_v50, %v325_v49 }
 0x269   : > { %v345_v52 = vsel %vm344_vm3, %v343_v51, 0.0 }
 0x26a   : > { %346 = vadd.xlane.f32.xlu1 %v345_v52 }
 0x2f3   : > { %v347_v59 = vpop.xlane.xlu1 %346 }
 0x2f4   : > { %v349_v60 = vmul.f32 0.33333334, %v347_v59 }
 0x2f6   : > { %v351_v61 = vsel %vm350_vm5, %v349_v60, 0.0 }
 0x2f7   : > { %v352_v63 = vrot.slane %v351_v61, 4 }
 0x2f9   : > { %v353_v0 = vadd.f32 %v352_v63, %v351_v61 }
 0x2fb   : > { %v354_v2 = vrot.slane %v353_v0, 2 }
 0x2fd   : > { %v355_v3 = vadd.f32 %v354_v2, %v353_v0 }
 0x2ff   : > { %v356_v5 = vrot.slane %v355_v3, 1 }
 0x301   : > { %v357_v6 = vadd.f32 %v356_v5, %v355_v3 }
 0x303   : > { %v359_v8 = vmul.f32 0.5, %v357_v6 }
 0x305   : > { %v568_v9 = vadd.f32 %v567_v7, %v359_v8 }
 0x307   : > { %v569_v13 = vmul.f32 0.5, %v568_v9 }
 0x309   : > { %571 = vst.msk [vmem:[%s139_s6] sm:$0x1] %vm570_vm6, %v569_v13 }
 0x30a PF: > { %s12_s9 = sadd.s32 1, %s704_s9  }
 0x30b   : > { %p9_p4 = scmp.ge.s32.totalorder %s12_s9, 4  }
 0x30d   :  { %11 = sbr.rel (!%p9_p4) target bundleno = 1 (0x1), region = 59 }

</bundles_post_ra>
